<compile_context>
chip_gen: v6e
topology: v6e:2x2x1
jax: 0.10.0
libtpu: 0.0.40
codegen_flags: <defaults>
</compile_context>

<pallas_src>
import functools

import jax
import jax.numpy as jnp
from jax import lax
from jax.experimental import pallas as pl
from jax.experimental.pallas import tpu as pltpu

LN_EPS = 1e-5


def _sinusoidal_encoding(max_length: int, hidden_size: int) -> jnp.ndarray:
    """Matches Embeddings.get_sinusoidal_encoding (PyTorch reference)."""
    position = jnp.arange(max_length, dtype=jnp.float32)[:, None]      # (L, 1)
    i = jnp.arange(hidden_size, dtype=jnp.float32)[None, :]            # (1, H)
    angle_rates = 1.0 / jnp.power(10000.0, 2.0 * jnp.floor(i / 2.0) / hidden_size)
    angle_rads = position * angle_rates                                # (L, H)
    even_mask = (jnp.arange(hidden_size) % 2) == 0
    return jnp.where(even_mask[None, :], jnp.sin(angle_rads),
                     jnp.cos(angle_rads)).astype(jnp.float32)


def _embeddings_kernel(ids_ref, pos_ref, gamma_ref, beta_ref, emb_hbm, out_ref,
                       rows_buf, sem, *, ts, seq_len):
    """One grid step processes `ts` tokens of one batch element.

    ids_ref   : (B*S,) int32 in SMEM (scalar prefetch, flattened)
    pos_ref   : (ts, H) f32 VMEM tile of the (S, H) positional table
    gamma_ref : (1, H) f32     beta_ref : (1, H) f32
    emb_hbm   : (V, H) embedding table, left in HBM (pl.ANY)
    out_ref   : (ts, H) output tile (batch dim squeezed), table dtype
    rows_buf  : (ts, H) VMEM scratch for the gathered rows (table dtype)
    sem       : scalar DMA semaphore shared by all row copies
    """
    s = pl.program_id(0)           # sequence-tile index (outer)
    b = pl.program_id(1)           # batch index (inner -> pos tile reused)
    flat_base = b * seq_len + s * ts

    # Gather `ts` embedding rows from HBM: start every copy first so the
    # per-row DMA latencies overlap, then drain the shared semaphore.
    def _issue(r, carry):
        tok = ids_ref[flat_base + r]
        pltpu.make_async_copy(emb_hbm.at[pl.ds(tok, 1)],
                              rows_buf.at[pl.ds(r, 1)],
                              sem).start()
        return carry

    lax.fori_loop(0, ts, _issue, 0)

    def _drain(r, carry):
        # Same-shape descriptor as each started copy -> waits for one row.
        pltpu.make_async_copy(emb_hbm.at[pl.ds(0, 1)],
                              rows_buf.at[pl.ds(0, 1)],
                              sem).wait()
        return carry

    lax.fori_loop(0, ts, _drain, 0)

    # token embedding + positional encoding, then LayerNorm over H (f32).
    h = rows_buf[...].astype(jnp.float32) + pos_ref[...]               # (ts, H)
    mean = jnp.mean(h, axis=-1, keepdims=True)
    centered = h - mean
    var = jnp.mean(centered * centered, axis=-1, keepdims=True)
    normed = centered * lax.rsqrt(var + LN_EPS)
    out_ref[...] = (normed * gamma_ref[...] + beta_ref[...]).astype(out_ref.dtype)


def _pick_row_tile(S: int, H: int, seq_tile: int) -> int:
    """Pick a row tile so ~6 live (ts, H) f32 tiles fit a ~12 MiB VMEM budget."""
    budget_rows = max(8, (12 * 1024 * 1024) // (6 * H * 4))
    cap = min(S, seq_tile, budget_rows)
    if cap >= S:
        return S
    ts = (cap // 8) * 8
    while ts >= 8 and S % ts:
        ts -= 8
    if ts < 8 or S % ts:
        # Fall back to a single tile covering the whole sequence.
        return S
    return ts


def embeddings_forward(x, emb_table, pos_table, gamma, beta, *, seq_tile=512):
    """x: (B, S) int token ids -> (B, S, H) in emb_table.dtype."""
    B, S = x.shape
    V, H = emb_table.shape
    assert pos_table.shape[0] >= S and pos_table.shape[1] == H

    ts = _pick_row_tile(S, H, seq_tile)
    out_dtype = emb_table.dtype

    # TODO(synk): out-of-range ids are clamped to [0, V-1]; nn.Embedding raises.
    ids = jnp.clip(x.astype(jnp.int32), 0, V - 1).reshape(B * S)       # (B*S,)
    pos_s = pos_table[:S].astype(jnp.float32)                          # (S, H)

    grid_spec = pltpu.PrefetchScalarGridSpec(
        num_scalar_prefetch=1,                 # ids -> SMEM
        # seq-tile outer / batch inner: the pos tile's block index is constant
        # across the inner axis, so it is DMA'd only S/ts times total.
        grid=(S // ts, B),
        in_specs=[
            # positional table: indexed by the sequence-tile axis only
            pl.BlockSpec((ts, H), lambda s, b, ids: (s, 0)),
            # LayerNorm affine params: same (1, H) block every step
            pl.BlockSpec((1, H), lambda s, b, ids: (0, 0)),
            pl.BlockSpec((1, H), lambda s, b, ids: (0, 0)),
            # embedding table stays in HBM; gathered manually via DMA
            pl.BlockSpec(memory_space=pl.ANY),
        ],
        out_specs=pl.BlockSpec((None, ts, H), lambda s, b, ids: (b, s, 0)),
        scratch_shapes=[
            pltpu.VMEM((ts, H), emb_table.dtype),
            pltpu.SemaphoreType.DMA(()),
        ],
    )

    out = pl.pallas_call(
        functools.partial(_embeddings_kernel, ts=ts, seq_len=S),
        grid_spec=grid_spec,
        out_shape=jax.ShapeDtypeStruct((B, S, H), out_dtype),
        compiler_params=pltpu.CompilerParams(
            dimension_semantics=("parallel", "parallel")),
    )(ids, pos_s,
      gamma.reshape(1, H).astype(jnp.float32),
      beta.reshape(1, H).astype(jnp.float32),
      emb_table)
    return out


def _reference_forward(x, emb_table, pos_table, gamma, beta):
    """Pure-JAX reference mirroring the PyTorch forward pass."""
    tok = emb_table[x].astype(jnp.float32)               # (B, S, H)
    pos = pos_table[: x.shape[1]][None, :, :]            # (1, S, H)
    h = tok + pos
    mean = jnp.mean(h, axis=-1, keepdims=True)
    var = jnp.mean(jnp.square(h - mean), axis=-1, keepdims=True)
    return (h - mean) * jax.lax.rsqrt(var + LN_EPS) * gamma + beta


if __name__ == "__main__":
    B, S, V, H = 2, 8, 64, 32

    key = jax.random.PRNGKey(0)
    k_ids, k_emb = jax.random.split(key)

    x = jax.random.randint(k_ids, (B, S), 0, V, dtype=jnp.int32)        # token ids
    emb_table = jax.random.normal(k_emb, (V, H), dtype=jnp.float32)     # nn.Embedding weight ~ N(0,1)
    pos_table = _sinusoidal_encoding(V, H)                              # (vocab_size, H) sinusoidal table
    gamma = jnp.ones((H,), dtype=jnp.float32)                           # LayerNorm weight init
    beta = jnp.zeros((H,), dtype=jnp.float32)                           # LayerNorm bias init

    out = embeddings_forward(x, emb_table, pos_table, gamma, beta)
    out = jax.block_until_ready(out)

    ref = _reference_forward(x, emb_table, pos_table, gamma, beta)
    assert out.shape == (B, S, H)
    assert jnp.allclose(out, ref, atol=1e-5, rtol=1e-5), "mismatch vs reference"

    print("KERNEL_OK")
</pallas_src>

<mosaic_0001>
module attributes {stable_mosaic.version = 11 : i64} {
  func.func @_embeddings_kernel(%arg0: i32, %arg1: i32, %arg2: memref<16xi32, #tpu.memory_space<smem>>, %arg3: memref<8x32xf32, #tpu.memory_space<vmem>>, %arg4: memref<1x32xf32, #tpu.memory_space<vmem>>, %arg5: memref<1x32xf32, #tpu.memory_space<vmem>>, %arg6: memref<64x32xf32, #tpu.memory_space<any>>, %arg7: memref<1x8x32xf32, #tpu.memory_space<vmem>>, %arg8: memref<8x32xf32, #tpu.memory_space<vmem>>, %arg9: memref<!tpu.dma_semaphore, #tpu.memory_space<semaphore_mem>>) attributes {dimension_semantics = [#tpu.dimension_semantics<parallel>, #tpu.dimension_semantics<parallel>], iteration_bounds = array<i64: 1, 2>, scalar_prefetch = 1 : i64, scratch_operands = 2 : i64, tpu.core_type = #tpu.core_type<tc>, window_params = [{transform_indices = @transform_0, window_bounds = array<i64: 8, 32>}, {pipeline_mode = #tpu.pipeline_mode<synchronous>, transform_indices = @transform_1, window_bounds = array<i64: 1, 32>}, {pipeline_mode = #tpu.pipeline_mode<synchronous>, transform_indices = @transform_2, window_bounds = array<i64: 1, 32>}, {}, {transform_indices = @transform_4, window_bounds = array<i64: 1, 8, 32>}]} {
    %c8_i32 = arith.constant 8 : i32
    %0 = arith.muli %arg1, %c8_i32 : i32
    %c8_i32_0 = arith.constant 8 : i32
    %1 = arith.muli %arg0, %c8_i32_0 : i32
    %2 = arith.addi %0, %1 : i32
    %c0_i32 = arith.constant 0 : i32
    %c8_i32_1 = arith.constant 8 : i32
    %3 = arith.addi %c0_i32, %c8_i32_1 : i32
    %c1_i32 = arith.constant 1 : i32
    scf.for %arg10 = %c0_i32 to %3 step %c1_i32  : i32 {
      %33 = arith.addi %2, %arg10 : i32
      %34 = arith.index_cast %33 : i32 to index
      %35 = memref.load %arg2[%34] : memref<16xi32, #tpu.memory_space<smem>>
      %c0_i32_20 = arith.constant 0 : i32
      %36 = tpu.memref_slice %arg6[%35, %c0_i32_20] : memref<64x32xf32, #tpu.memory_space<any>> -> memref<1x32xf32, #tpu.memory_space<any>>
      %c0_i32_21 = arith.constant 0 : i32
      %37 = tpu.memref_slice %arg8[%arg10, %c0_i32_21] : memref<8x32xf32, #tpu.memory_space<vmem>> -> memref<1x32xf32, #tpu.memory_space<vmem>>
      tpu.enqueue_dma source(%36 : memref<1x32xf32, #tpu.memory_space<any>>) target(%37 : memref<1x32xf32, #tpu.memory_space<vmem>>) target_semaphore(%arg9 : memref<!tpu.dma_semaphore, #tpu.memory_space<semaphore_mem>>)
    }
    %c8_i32_2 = arith.constant 8 : i32
    %c0_i32_3 = arith.constant 0 : i32
    %c8_i32_4 = arith.constant 8 : i32
    %4 = arith.addi %c0_i32_3, %c8_i32_4 : i32
    %c1_i32_5 = arith.constant 1 : i32
    scf.for %arg10 = %c0_i32_3 to %4 step %c1_i32_5  : i32 {
      %c0_i32_20 = arith.constant 0 : i32
      %c0_i32_21 = arith.constant 0 : i32
      %33 = tpu.memref_slice %arg6[%c0_i32_20, %c0_i32_21] : memref<64x32xf32, #tpu.memory_space<any>> -> memref<1x32xf32, #tpu.memory_space<any>>
      %c0_i32_22 = arith.constant 0 : i32
      %c0_i32_23 = arith.constant 0 : i32
      %34 = tpu.memref_slice %arg8[%c0_i32_22, %c0_i32_23] : memref<8x32xf32, #tpu.memory_space<vmem>> -> memref<1x32xf32, #tpu.memory_space<vmem>>
      tpu.wait_dma2 semaphore(%arg9 : memref<!tpu.dma_semaphore, #tpu.memory_space<semaphore_mem>>) src(%33 : memref<1x32xf32, #tpu.memory_space<any>>) dst(%34 : memref<1x32xf32, #tpu.memory_space<vmem>>)
    }
    %c0 = arith.constant 0 : index
    %c0_6 = arith.constant 0 : index
    %5 = vector.load %arg8[%c0, %c0_6] : memref<8x32xf32, #tpu.memory_space<vmem>>, vector<8x32xf32>
    %c0_7 = arith.constant 0 : index
    %c0_8 = arith.constant 0 : index
    %6 = vector.load %arg3[%c0_7, %c0_8] : memref<8x32xf32, #tpu.memory_space<vmem>>, vector<8x32xf32>
    %7 = arith.addf %5, %6 : vector<8x32xf32>
    %cst = arith.constant dense<0.000000e+00> : vector<8xf32>
    %8 = vector.multi_reduction <add>, %7, %cst [1] : vector<8x32xf32> to vector<8xf32>
    %9 = vector.shape_cast %8 : vector<8xf32> to vector<8x1xf32>
    %cst_9 = arith.constant 3.200000e+01 : f32
    %10 = vector.broadcast %cst_9 : f32 to vector<8x1xf32>
    %11 = arith.divf %9, %10 : vector<8x1xf32>
    %12 = vector.broadcast %11 : vector<8x1xf32> to vector<8x32xf32>
    %13 = arith.subf %7, %12 : vector<8x32xf32>
    %14 = arith.mulf %13, %13 : vector<8x32xf32>
    %cst_10 = arith.constant dense<0.000000e+00> : vector<8xf32>
    %15 = vector.multi_reduction <add>, %14, %cst_10 [1] : vector<8x32xf32> to vector<8xf32>
    %16 = vector.shape_cast %15 : vector<8xf32> to vector<8x1xf32>
    %cst_11 = arith.constant 3.200000e+01 : f32
    %17 = vector.broadcast %cst_11 : f32 to vector<8x1xf32>
    %18 = arith.divf %16, %17 : vector<8x1xf32>
    %cst_12 = arith.constant 9.99999974E-6 : f32
    %19 = vector.broadcast %cst_12 : f32 to vector<8x1xf32>
    %20 = arith.addf %18, %19 : vector<8x1xf32>
    %21 = math.rsqrt %20 : vector<8x1xf32>
    %22 = vector.broadcast %21 : vector<8x1xf32> to vector<8x32xf32>
    %23 = arith.mulf %13, %22 : vector<8x32xf32>
    %c0_13 = arith.constant 0 : index
    %c0_14 = arith.constant 0 : index
    %24 = vector.load %arg4[%c0_13, %c0_14] : memref<1x32xf32, #tpu.memory_space<vmem>>, vector<1x32xf32>
    %25 = vector.broadcast %24 : vector<1x32xf32> to vector<8x32xf32>
    %26 = arith.mulf %23, %25 : vector<8x32xf32>
    %c0_15 = arith.constant 0 : index
    %c0_16 = arith.constant 0 : index
    %27 = vector.load %arg5[%c0_15, %c0_16] : memref<1x32xf32, #tpu.memory_space<vmem>>, vector<1x32xf32>
    %28 = vector.broadcast %27 : vector<1x32xf32> to vector<8x32xf32>
    %29 = arith.addf %26, %28 : vector<8x32xf32>
    %c0_17 = arith.constant 0 : index
    %c0_18 = arith.constant 0 : index
    %c0_19 = arith.constant 0 : index
    %30 = vector.load %arg7[%c0_17, %c0_18, %c0_19] : memref<1x8x32xf32, #tpu.memory_space<vmem>>, vector<1x8x32xf32>
    %31 = vector.shape_cast %30 : vector<1x8x32xf32> to vector<8x32xf32>
    %32 = vector.shape_cast %29 : vector<8x32xf32> to vector<1x8x32xf32>
    tpu.vector_store %arg7[%c0_17, %c0_18, %c0_19], %32 {strides = array<i32>} : memref<1x8x32xf32, #tpu.memory_space<vmem>>, vector<1x8x32xf32>,
    return
  }
  func.func @transform_0(%arg0: i32, %arg1: i32, %arg2: memref<16xi32, #tpu.memory_space<smem>>) -> (i32, i32) {
    %c0_i32 = arith.constant 0 : i32
    %c0_i32_0 = arith.constant 0 : i32
    return %arg0, %c0_i32 : i32, i32
  }
  func.func @transform_1(%arg0: i32, %arg1: i32, %arg2: memref<16xi32, #tpu.memory_space<smem>>) -> (i32, i32) {
    %c0_i32 = arith.constant 0 : i32
    %c0_i32_0 = arith.constant 0 : i32
    %c0_i32_1 = arith.constant 0 : i32
    return %c0_i32, %c0_i32_0 : i32, i32
  }
  func.func @transform_2(%arg0: i32, %arg1: i32, %arg2: memref<16xi32, #tpu.memory_space<smem>>) -> (i32, i32) {
    %c0_i32 = arith.constant 0 : i32
    %c0_i32_0 = arith.constant 0 : i32
    %c0_i32_1 = arith.constant 0 : i32
    return %c0_i32, %c0_i32_0 : i32, i32
  }
  func.func @transform_4(%arg0: i32, %arg1: i32, %arg2: memref<16xi32, #tpu.memory_space<smem>>) -> (i32, i32, i32) {
    %c0_i32 = arith.constant 0 : i32
    %c0_i32_0 = arith.constant 0 : i32
    return %arg1, %arg0, %c0_i32 : i32, i32, i32
  }
}

</mosaic_0001>

<bundles_post_ra>
// kernel: tpu_custom_call.1
= control target key start
LH: loop header
LB: loop body
LE: loop exit
PB: predicated region body
PF: predicated region fallthrough
CT: control target
= control target key end

     0   :  { %s759_s0 = inlined_call_operand.vmem [shape: s32[16], index: 0, kind: input, shape index: {}]   ;;  %s760_s1 = inlined_call_operand.vmem [shape: f32[8,32], index: 1, kind: input, shape index: {}]   ;;  %s761_s2 = inlined_call_operand.vmem [shape: f32[1,32], index: 2, kind: input, shape index: {}]   ;;  %s762_s3 = inlined_call_operand.vmem [shape: f32[1,32], index: 3, kind: input, shape index: {}]   ;;  %s763_s4 = inlined_call_operand.vmem [shape: f32[64,32], index: 4, kind: input, shape index: {}]   ;;  %s764_s5 = inlined_call_operand.hbm [shape: f32[2,8,32], index: 5, kind: output, shape index: {}]  }
   0x1   :  { %s10_s20 = sshll.u32 %s759_s0, 4  ;;  %s11_s20 = int_to_ptr.vmem [resolvable:$true] %s10_s20 }
   0x2   :  { %s493_s21 = scalar_lea.vmem %s11_s20, 16  ;;  %p498_p1 = scmp.lt.s32.totalorder %s11_s20, %s11_s20 }
   0x3   :  { %p494_p0 = scmp.ne.s32.totalorder %s11_s20, %s493_s21  ;;  %p499_p2 = scmp.lt.s32.totalorder %s493_s21, %s493_s21 }
   0x5   :  { %p500_p3 = por %p499_p2, %p498_p1 }
   0x7   :  { %p501_p4 = pnand %p500_p3, %p494_p0 }
   0x9   :  { %504 = shalt.err (!%p501_p4)  }
   0xa   :  { %s603_s22 = smov [#allocation5]  }
   0xb   :  { %13 = dma.vmem_to_smem %s11_s20, 16, %s603_s22, [#allocation4] }
   0xc   :  { %563 = dma.done.wait [#allocation4], 16 }
   0xd   :  { %564 = vsyncadd [#allocation4], 4294967280 }
   0xe   :  { %15 = sfence }
   0xf   :  { %16 = vsyncpa [#allocation7], 0 }
  0x10   :  { %18 = vsyncpa [#allocation7 + $0x1], 0  ;;  %s638_s23 = smov 0   ;;  %s640_s24 = smov 0  }
  0x11   :  { %s642_s0 = smov 0   ;;  %s644_s25 = smov 0  }
  0x12   :  { %s646_s26 = smov 0   ;;  %s648_s27 = smov 0  }
  0x13 LB: > { %s405_s28 = sadd.s32 4294967295, %s593_s27   ;;  %s406_s29 = sadd.s32 4294967294, %s593_s27   ;;  %s593_s27 = sphi %s648_s27, %s24_s27   ;;  %s589_s26 = sphi %s646_s26, %s771_s26   ;;  %s585_s25 = sphi %s644_s25, %s770_s25   ;;  %s581_s0 = sphi %s642_s0, %s769_s0   ;;  %s577_s24 = sphi %s640_s24, %s768_s24   ;;  %s573_s23 = sphi %s638_s23, %s767_s23  }
  0x14   : > { %s33_s30 = sadd.s32 1, %s589_s26  ;;  %s113_s6 = sadd.s32 1, %s581_s0 }
  0x15   : > { %p34_p5 = scmp.ge.s32.totalorder %s33_s30, 2  ;;  %p123_p6 = scmp.ne.s32.totalorder %s581_s0, %s577_s24 }
  0x16   : > { %p124_p7 = scmp.eq.s32.totalorder %s405_s28, 1  ;;  %p129_p8 = scmp.ne.s32.totalorder %s577_s24, %s573_s23 }
  0x17   : > { %s773_s30 = smov (%p34_p5, %s33_s30), 0  ;;  %p130_p10 = scmp.eq.s32.totalorder %s406_s29, 1 }
  0x18   : > { %p678_p9 = por %p124_p7, %p123_p6  ;;  %s108_s8 = ssub.s32 %s589_s26, %s773_s30 }
  0x19   : > { %p409_p11 = scmp.ge.s32.totalorder %s593_s27, 1  ;;  %p111_p12 = scmp.eq.s32.totalorder %s108_s8, 0 }
  0x1a   : > { %p685_p13 = por %p130_p10, %p129_p8  ;;  %p161_p0 = scmp.lt.s32.totalorder %s593_s27, 3 }
  0x1b   : > { %s691_s10 = scalar_select %p111_p12, %s581_s0, %s113_s6  }
  0x1c   : > { %p162_p1 = pnand %p409_p11, %p161_p0 }
  0x1d   : > { %s181_s11 = sand.u32 (!%p162_p1), 1, %s577_s24   ;;  %s411_s12 = sshll.u32 (!%p162_p1), %s585_s25, 3 }
  0x1e   : > { %165 = sbr.rel (%p162_p1) target bundleno = 381 (0x17d), region = 32  ;;  %s697_s13 = sshll.u32 (!%p162_p1), %s181_s11, 3 }
  0x1f   : > { %s183_s14 = scalar_lea.vmem (!%p162_p1), [#allocation6], %s697_s13  ;;  %s595_s15 = smov (!%p162_p1), 0  }
  0x23 LB: >> { %s197_s16 = sadd.s32 %s597_s15, %s411_s12  ;;  %s200_s21 = scalar_lea.vmem [#allocation2], %s597_s15  ;;  %s597_s15 = sphi %s595_s15, %s196_s15  }
  0x24   : >> { %s198_s17 = sld [smem:[#allocation5 + %s197_s16]] }
  0x2a   : >> { %s199_s20 = scalar_lea.vmem %s763_s4, %s198_s17 }
  0x2b   : >> { %v219_v0 = vld [vmem:[%s199_s20] sm:$0x1] }
  0x2c   : >> { %220 = vst [vmem:[%s200_s21] sm:$0x1] %v219_v0 }
  0x2d   : >> { %246 = vsyncadd [#allocation3], 16  ;;  %s196_s15 = sadd.s32 1, %s597_s15  }
  0x2e   : >> { %p193_p2 = scmp.ge.s32.totalorder %s196_s15, 8  }
  0x2f   : > { %s599_s22 = smov (%p193_p2), 0  }
  0x30   : > { %195 = sbr.rel (!%p193_p2) target bundleno = 35 (0x23), region = 123 }
  0x35 LB: >> { %565 = dma.done.wait [#allocation3], 16  ;;  %s601_s22 = sphi %s599_s22, %s252_s22  }
  0x36   : >> { %566 = vsyncadd [#allocation3], 4294967280  ;;  %s252_s22 = sadd.s32 1, %s601_s22  }
  0x37   : >> { %p249_p3 = scmp.ge.s32.totalorder %s252_s22, 8  }
  0x38   : > { %v256_v1 = vld [vmem:[#allocation2] sm:$0xff] (%p249_p3)  ;;  %vm259_vm0 = vcmask (%p249_p3), 261120   ;;  %s415_s16 = sshll.u32 (%p249_p3), %s585_s25, 7  ;;  %s306_s17 = sshll.u32 (%p249_p3), %s183_s14, 4  ;;  %s307_s17 = int_to_ptr.vmem [resolvable:$true] %s306_s17 }
  0x39   : > { %251 = sbr.rel (!%p249_p3) target bundleno = 53 (0x35), region = 134  ;;  %v257_v2 = vld [vmem:[%s760_s1] sm:$0xff] (%p249_p3)  ;;  %s304_s20 = scalar_lea.hbm (%p249_p3), %s764_s5, %s415_s16 }
  0x3a   : > { %v258_v3 = vadd.f32 (%p249_p3), %v257_v2, %v256_v1  ;;  %v412_v14 = vld [vmem:[%s761_s2] ss:$0 sm:$0xff] (%p249_p3)  ;;  %s292_s21 = scalar_lea.sflag (%p249_p3), [#allocation7], %s181_s11  ;;  %s505_s22 = scalar_lea.vmem (%p249_p3), %s307_s17, 128 }
  0x3b   : > { %v413_v16 = vld [vmem:[%s762_s3] ss:$0 sm:$0xff] (%p249_p3)  ;;  %p506_p4 = scmp.ne.s32.totalorder (%p249_p3), %s307_s17, %s505_s22  ;;  %s604_s25 = smov (%p249_p3), [#allocation6]  }
  0x3c   : > { %v260_v4 = vsel (%p249_p3), %vm259_vm0, %v258_v3, 0.0  ;;  %s509_s28 = sshll.u32 (%p249_p3), %s604_s25, 4  ;;  %s510_s28 = int_to_ptr.vmem [resolvable:$false] %s509_s28 }
  0x3d   : > { %261 = vadd.xlane.f32.xlu0 (%p249_p3), %v260_v4  ;;  %p507_p5 = pnand (%p249_p3), %p506_p4, %p678_p9  ;;  %s511_s29 = scalar_lea.vmem (%p249_p3), %s510_s28, 256 }
  0x3e   : > { %p512_p7 = scmp.lt.s32.totalorder %s307_s17, %s510_s28  ;;  %p513_p8 = scmp.lt.s32.totalorder %s511_s29, %s505_s22 }
  0x3f   : > { %p508_p6 = pneg %p507_p5 }
  0x40   : > { %p514_p10 = por %p513_p8, %p512_p7 }
  0x42   : > { %p515_p11 = pnand %p514_p10, %p508_p6 }
  0xc6   : > { %v262_v5 = vpop.xlane.xlu0 %261 }
  0xc7   : > { %v264_v6 = vmul.f32 0.03125, %v262_v5 }
  0xc9   : > { %v265_v7 = vsub.f32 %v258_v3, %v264_v6 }
  0xcb   : > { %v266_v8 = vmul.f32 %v265_v7, %v265_v7 }
  0xcd   : > { %v267_v9 = vsel %vm259_vm0, %v266_v8, 0.0 }
  0xce   : > { %268 = vadd.xlane.f32.xlu0 %v267_v9 }
 0x157   : > { %v269_v10 = vpop.xlane.xlu0 %268 }
 0x158   : > { %v270_v11 = vmul.f32 0.03125, %v269_v10 }
 0x15a   : > { %v271_v12 = vadd.f32 1e-05, %v270_v11 }
 0x15c   : > { %491 = vrsqrt.f32 %v271_v12 }
 0x169   : > { %v492_v13 = vpop.eup %491 }
 0x16a   : > { %v273_v15 = vmul.f32 %v492_v13, %v265_v7 }
 0x16c   : > { %v281_v17 = vmul.f32 %v412_v14, %v273_v15 }
 0x16e   : > { %v289_v18 = vadd.f32 %v413_v16, %v281_v17 }
 0x170   : > { %290 = vst.msk [vmem:[%s183_s14] sm:$0xff] %vm259_vm0, %v289_v18 }
 0x171   : > { %518 = shalt.err (!%p515_p11)
}
 0x172   : > { %s519_s6 = scalar_lea.hbm %s304_s20, 128  ;;  %s523_s14 = scalar_lea.hbm %s764_s5, 256 }
 0x173   : > { %p520_p12 = scmp.ne.s32.totalorder %s304_s20, %s519_s6  ;;  %p524_p2 = scmp.lt.s32.totalorder %s304_s20, %s764_s5 }
 0x174   : > { %p525_p3 = scmp.lt.s32.totalorder %s523_s14, %s519_s6 }
 0x175   : > { %p521_p0 = pnand %p520_p12, %p678_p9 }
 0x176   : > { %p526_p4 = por %p525_p3, %p524_p2 }
 0x177   : > { %p522_p1 = pneg %p521_p0 }
 0x179   : > { %p527_p5 = pnand %p526_p4, %p522_p1 }
 0x17b   : > { %530 = shalt.err (!%p527_p5)
}
 0x17c   : > { %419 = dma.vmem_to_hbm [thread:$0]  (%p678_p9), %s307_s17, 128, %s304_s20, %s292_s21  }
 0x17d PF: > { %p425_p6 = scmp.ge.s32.totalorder %s593_s27, 2  ;;  %s318_s15 = sand.u32 1, %s573_s23  }
 0x17e   : > { %s319_s16 = scalar_lea.sflag [#allocation7], %s318_s15 }
 0x17f   : > { %p422_p7 = pnand %p425_p6, %p685_p13 }
 0x181   : > { %p423_p8 = pneg %p422_p7 }
 0x183   : > { %568 = dma.done.wait (%p423_p8), %s319_s16, 128  }
 0x184   : > { %570 = vsyncadd (%p423_p8), %s319_s16, 4294967168  ;;  %s24_s27 = sadd.s32 1, %s593_s27   ;;  %s767_s23 = smov %s577_s24 }
 0x185   : > { %p21_p10 = scmp.ge.s32.totalorder %s24_s27, 4   ;;  %s768_s24 = smov %s581_s0 }
 0x186   : > { %s769_s0 = smov %s691_s10  ;;  %s770_s25 = smov %s589_s26 }
 0x187   : > { %s771_s26 = smov %s773_s30  ;;  %23 = sbr.rel (!%p21_p10) target bundleno = 19 (0x13), region = 145 }
 0x18c   :  { %324 = vsyncpa [#allocation7], 1 }
 0x18d   :  { %326 = vsyncpa [#allocation7 + $0x1], 1 }
 0x18e   :  { %327 = vsyncmov [#allocation3] }
 0x191   :  { %s328_s7 = vpop.sfrf %327 }
 0x192   :  { %p418_p9 = scmp.ne.s32.totalorder %s328_s7, 0 }
 0x194   :  { %332 = shalt.err (%p418_p9)  }

</bundles_post_ra>
